<compile_context>
chip_gen: v7x
topology: tpu7x:2x2x1
jax: 0.10.0
libtpu: 0.0.40
codegen_flags: <defaults>
</compile_context>

<pallas_src>
import functools

import jax
import jax.numpy as jnp
import numpy as np
from jax import lax
from jax.experimental import pallas as pl
from jax.experimental.pallas import tpu as pltpu


def lstm_fc_kernel(x_ref, fslab_ref, wslab_ref, out_ref, *, B, T, H):
    # x_ref:     (B*T,) f32 in SMEM — row-major flatten of batch_first (B, T, 1).
    # fslab_ref: (3, W)  f32 in VMEM — row 0: w_ih (D=1), row 1: bias, row 2: fc_b (padded).
    # wslab_ref: (2H, W) bf16 in VMEM — rows [0:H]: w_hh^T, rows [H:2H]: fc_w^T (padded).
    # out_ref:   (B, W)  f32 in VMEM — lane-dense output; wrapper slices to (B, F).
    fslab = fslab_ref[...]                 # (3, W) f32
    w_row = fslab[0:1, :]                  # (1, W)  input->gate weights (D == 1)
    b_row = fslab[1:2, :]                  # (1, W)  b_ih + b_hh
    fc_b = fslab[2:3, :]                   # (1, W)  padded FC bias

    w_hh = wslab_ref[0:H, :]               # (H, W) bf16  hidden->gate weights
    fc_w = wslab_ref[H:2 * H, :]           # (H, W) bf16  padded FC weights

    # ---- Input projection hoisted off the recurrence ----
    # D == 1 -> pure scalar-broadcast VPU multiply-adds from SMEM scalars
    # (no vector DMA for x, no cross-lane relayout, bias folded in once).
    pre = []
    for t in range(T):
        rows = [x_ref[b * T + t] * w_row for b in range(B)]   # scalar * (1, W)
        pre.append(jnp.concatenate(rows, axis=0) + b_row)     # (B, W)

    # ---- Recurrence: only h @ w_hh (bf16 MXU operands, f32 accumulate) per step ----
    h = jnp.zeros((B, H), jnp.float32)
    c = jnp.zeros((B, H), jnp.float32)
    for t in range(T):                     # T static & tiny -> full unroll
        gates = jnp.dot(h.astype(jnp.bfloat16), w_hh,
                        preferred_element_type=jnp.float32) + pre[t]   # (B, W)
        # 2 EUP launches over the full 128-lane gate tile, then H-lane slices.
        sig = jax.nn.sigmoid(gates)
        tnh = jnp.tanh(gates)
        i_g = sig[:, 0:H]
        f_g = sig[:, H:2 * H]
        g_g = tnh[:, 2 * H:3 * H]
        o_g = sig[:, 3 * H:4 * H]
        c = f_g * c + i_g * g_g
        h = o_g * jnp.tanh(c)

    # ---- Final linear on last hidden state (bf16 MXU tail, lane-dense store) ----
    out_ref[...] = (
        jnp.dot(h.astype(jnp.bfloat16), fc_w, preferred_element_type=jnp.float32)
        + fc_b
    )


def simple_lstm_forward(x, packed_params):
    """x: (B, T, D=1) batch_first float32. Returns (B, future_steps)."""
    fslab, wslab, F = packed_params
    B, T, D = x.shape
    assert D == 1, "slab layout packs w_ih as a single 128-lane row (input_dim == 1)"
    H = wslab.shape[0] // 2
    W = fslab.shape[1]

    x_flat = x.reshape(B * T)   # row-major: element b*T + t == x[b, t, 0]

    kernel = functools.partial(lstm_fc_kernel, B=B, T=T, H=H)
    out_pad = pl.pallas_call(
        kernel,
        out_shape=jax.ShapeDtypeStruct((B, W), jnp.float32),
        in_specs=[
            pl.BlockSpec(memory_space=pltpu.MemorySpace.SMEM),   # x scalars
            pl.BlockSpec(memory_space=pltpu.MemorySpace.VMEM),   # f32 slab
            pl.BlockSpec(memory_space=pltpu.MemorySpace.VMEM),   # bf16 weight slab
        ],
        out_specs=pl.BlockSpec(memory_space=pltpu.MemorySpace.VMEM),
    )(x_flat, fslab, wslab)
    return out_pad[:, :F]


def init_params(key, input_dim, hidden, future_steps):
    """Deterministic PyTorch-style init (uniform(-1/sqrt(hidden), 1/sqrt(hidden)))."""
    ks = jax.random.split(key, 6)
    bound = 1.0 / np.sqrt(hidden)
    u = lambda k, shp: jax.random.uniform(k, shp, jnp.float32, -bound, bound)
    w_ih = u(ks[0], (4 * hidden, input_dim))   # PyTorch weight_ih_l0
    w_hh = u(ks[1], (4 * hidden, hidden))      # PyTorch weight_hh_l0
    b_ih = u(ks[2], (4 * hidden,))
    b_hh = u(ks[3], (4 * hidden,))
    fc_w = u(ks[4], (future_steps, hidden))    # PyTorch Linear weight
    fc_b = u(ks[5], (future_steps,))
    # right-multiply layout for the reference
    return (
        w_ih.T,                       # (D, 4H)
        w_hh.T,                       # (H, 4H)
        (b_ih + b_hh)[None, :],       # (1, 4H)
        fc_w.T,                       # (H, F)
        fc_b[None, :],                # (1, F)
    )


def pack_params(raw_params):
    """One-time (per-model) packing into two lane-dense slabs for the kernel."""
    w_ih_t, w_hh_t, b, fc_w_t, fc_b = raw_params
    D, G = w_ih_t.shape            # G = 4H
    H, F = fc_w_t.shape
    assert D == 1, "slab layout assumes input_dim == 1"
    F_pad = ((F + 127) // 128) * 128
    W = max(G, F_pad)
    pad_w = lambda a: jnp.pad(a, ((0, 0), (0, W - a.shape[1])))

    fslab = jnp.concatenate(
        [pad_w(w_ih_t), pad_w(b), pad_w(fc_b)], axis=0
    ).astype(jnp.float32)                                      # (3, W)
    wslab = jnp.concatenate(
        [pad_w(w_hh_t), pad_w(fc_w_t)], axis=0
    ).astype(jnp.bfloat16)                                     # (2H, W)
    return fslab, wslab, F


def reference_forward(x, raw_params, matmul_dtype=jnp.float32):
    """Plain-JAX reference. matmul_dtype=bf16 mirrors the kernel's MXU operand casts."""
    w_ih_t, w_hh_t, b, fc_w_t, fc_b = raw_params
    B, T, D = x.shape
    H = w_hh_t.shape[0]
    w_hh_m = w_hh_t.astype(matmul_dtype)
    fc_w_m = fc_w_t.astype(matmul_dtype)

    def step(carry, x_t):
        h, c = carry
        gates = (
            x_t @ w_ih_t + b
            + jnp.dot(h.astype(matmul_dtype), w_hh_m,
                      preferred_element_type=jnp.float32)
        )
        i_g = jax.nn.sigmoid(gates[:, 0:H])
        f_g = jax.nn.sigmoid(gates[:, H:2 * H])
        g_g = jnp.tanh(gates[:, 2 * H:3 * H])
        o_g = jax.nn.sigmoid(gates[:, 3 * H:4 * H])
        c_new = f_g * c + i_g * g_g
        h_new = o_g * jnp.tanh(c_new)
        return (h_new, c_new), None

    (h_fin, _), _ = lax.scan(
        step,
        (jnp.zeros((B, H), jnp.float32), jnp.zeros((B, H), jnp.float32)),
        jnp.transpose(x, (1, 0, 2)),
    )
    return (jnp.dot(h_fin.astype(matmul_dtype), fc_w_m,
                    preferred_element_type=jnp.float32) + fc_b)


if __name__ == "__main__":
    batch = 2
    seq = 8
    input_dim = 1          # matches module's input_dim
    lstm_output_dim = 32   # hidden size -> 4H = 128 lanes (vreg/MXU friendly)
    future_steps = 10      # matches module's future_steps

    key = jax.random.PRNGKey(0)
    k_param, k_x = jax.random.split(key)
    raw_params = init_params(k_param, input_dim, lstm_output_dim, future_steps)
    packed_params = pack_params(raw_params)   # hoisted out of the per-call path
    x = jax.random.normal(k_x, (batch, seq, input_dim), jnp.float32)

    # jit the wrapper so the flatten / output slice fuse with the kernel dispatch.
    forward = jax.jit(lambda xx: simple_lstm_forward(xx, packed_params))
    out = jax.block_until_ready(forward(x))

    # Implementation check: reference with the same bf16 MXU operand casts.
    ref_bf16 = reference_forward(x, raw_params, matmul_dtype=jnp.bfloat16)
    np.testing.assert_allclose(np.asarray(out), np.asarray(ref_bf16),
                               rtol=1e-3, atol=1e-3)

    # Module-semantics check: pure-f32 reference (only bf16 operand rounding differs).
    ref_f32 = reference_forward(x, raw_params, matmul_dtype=jnp.float32)
    np.testing.assert_allclose(np.asarray(out), np.asarray(ref_f32),
                               rtol=5e-2, atol=5e-2)

    print("KERNEL_OK")
</pallas_src>

<mosaic_0001>
module attributes {stable_mosaic.version = 11 : i64} {
  func.func @lstm_fc_kernel(%arg0: memref<16xf32, #tpu.memory_space<smem>>, %arg1: memref<3x128xf32, #tpu.memory_space<vmem>>, %arg2: memref<64x128xbf16, #tpu.memory_space<vmem>>, %arg3: memref<2x128xf32, #tpu.memory_space<vmem>>) attributes {dimension_semantics = [], scalar_prefetch = 0 : i64, scratch_operands = 0 : i64, tpu.core_type = #tpu.core_type<tc>} {
    %c0 = arith.constant 0 : index
    %c0_0 = arith.constant 0 : index
    %0 = vector.load %arg1[%c0, %c0_0] : memref<3x128xf32, #tpu.memory_space<vmem>>, vector<3x128xf32>
    %1 = vector.extract_strided_slice %0 {offsets = [0, 0], sizes = [1, 128], strides = [1, 1]} : vector<3x128xf32> to vector<1x128xf32>
    %2 = vector.extract_strided_slice %0 {offsets = [1, 0], sizes = [1, 128], strides = [1, 1]} : vector<3x128xf32> to vector<1x128xf32>
    %3 = vector.extract_strided_slice %0 {offsets = [2, 0], sizes = [1, 128], strides = [1, 1]} : vector<3x128xf32> to vector<1x128xf32>
    %c0_1 = arith.constant 0 : index
    %c0_2 = arith.constant 0 : index
    %4 = vector.load %arg2[%c0_1, %c0_2] : memref<64x128xbf16, #tpu.memory_space<vmem>>, vector<32x128xbf16>
    %c32 = arith.constant 32 : index
    %c0_3 = arith.constant 0 : index
    %5 = vector.load %arg2[%c32, %c0_3] : memref<64x128xbf16, #tpu.memory_space<vmem>>, vector<32x128xbf16>
    %c0_4 = arith.constant 0 : index
    %6 = memref.load %arg0[%c0_4] : memref<16xf32, #tpu.memory_space<smem>>
    %7 = vector.broadcast %6 : f32 to vector<1x128xf32>
    %8 = arith.mulf %7, %1 : vector<1x128xf32>
    %c8 = arith.constant 8 : index
    %9 = memref.load %arg0[%c8] : memref<16xf32, #tpu.memory_space<smem>>
    %10 = vector.broadcast %9 : f32 to vector<1x128xf32>
    %11 = arith.mulf %10, %1 : vector<1x128xf32>
    %12 = tpu.concatenate %8, %11 in 0 : vector<1x128xf32>, vector<1x128xf32> -> vector<2x128xf32>
    %13 = vector.broadcast %2 : vector<1x128xf32> to vector<2x128xf32>
    %14 = arith.addf %12, %13 : vector<2x128xf32>
    %c1 = arith.constant 1 : index
    %15 = memref.load %arg0[%c1] : memref<16xf32, #tpu.memory_space<smem>>
    %16 = vector.broadcast %15 : f32 to vector<1x128xf32>
    %17 = arith.mulf %16, %1 : vector<1x128xf32>
    %c9 = arith.constant 9 : index
    %18 = memref.load %arg0[%c9] : memref<16xf32, #tpu.memory_space<smem>>
    %19 = vector.broadcast %18 : f32 to vector<1x128xf32>
    %20 = arith.mulf %19, %1 : vector<1x128xf32>
    %21 = tpu.concatenate %17, %20 in 0 : vector<1x128xf32>, vector<1x128xf32> -> vector<2x128xf32>
    %22 = vector.broadcast %2 : vector<1x128xf32> to vector<2x128xf32>
    %23 = arith.addf %21, %22 : vector<2x128xf32>
    %c2 = arith.constant 2 : index
    %24 = memref.load %arg0[%c2] : memref<16xf32, #tpu.memory_space<smem>>
    %25 = vector.broadcast %24 : f32 to vector<1x128xf32>
    %26 = arith.mulf %25, %1 : vector<1x128xf32>
    %c10 = arith.constant 10 : index
    %27 = memref.load %arg0[%c10] : memref<16xf32, #tpu.memory_space<smem>>
    %28 = vector.broadcast %27 : f32 to vector<1x128xf32>
    %29 = arith.mulf %28, %1 : vector<1x128xf32>
    %30 = tpu.concatenate %26, %29 in 0 : vector<1x128xf32>, vector<1x128xf32> -> vector<2x128xf32>
    %31 = vector.broadcast %2 : vector<1x128xf32> to vector<2x128xf32>
    %32 = arith.addf %30, %31 : vector<2x128xf32>
    %c3 = arith.constant 3 : index
    %33 = memref.load %arg0[%c3] : memref<16xf32, #tpu.memory_space<smem>>
    %34 = vector.broadcast %33 : f32 to vector<1x128xf32>
    %35 = arith.mulf %34, %1 : vector<1x128xf32>
    %c11 = arith.constant 11 : index
    %36 = memref.load %arg0[%c11] : memref<16xf32, #tpu.memory_space<smem>>
    %37 = vector.broadcast %36 : f32 to vector<1x128xf32>
    %38 = arith.mulf %37, %1 : vector<1x128xf32>
    %39 = tpu.concatenate %35, %38 in 0 : vector<1x128xf32>, vector<1x128xf32> -> vector<2x128xf32>
    %40 = vector.broadcast %2 : vector<1x128xf32> to vector<2x128xf32>
    %41 = arith.addf %39, %40 : vector<2x128xf32>
    %c4 = arith.constant 4 : index
    %42 = memref.load %arg0[%c4] : memref<16xf32, #tpu.memory_space<smem>>
    %43 = vector.broadcast %42 : f32 to vector<1x128xf32>
    %44 = arith.mulf %43, %1 : vector<1x128xf32>
    %c12 = arith.constant 12 : index
    %45 = memref.load %arg0[%c12] : memref<16xf32, #tpu.memory_space<smem>>
    %46 = vector.broadcast %45 : f32 to vector<1x128xf32>
    %47 = arith.mulf %46, %1 : vector<1x128xf32>
    %48 = tpu.concatenate %44, %47 in 0 : vector<1x128xf32>, vector<1x128xf32> -> vector<2x128xf32>
    %49 = vector.broadcast %2 : vector<1x128xf32> to vector<2x128xf32>
    %50 = arith.addf %48, %49 : vector<2x128xf32>
    %c5 = arith.constant 5 : index
    %51 = memref.load %arg0[%c5] : memref<16xf32, #tpu.memory_space<smem>>
    %52 = vector.broadcast %51 : f32 to vector<1x128xf32>
    %53 = arith.mulf %52, %1 : vector<1x128xf32>
    %c13 = arith.constant 13 : index
    %54 = memref.load %arg0[%c13] : memref<16xf32, #tpu.memory_space<smem>>
    %55 = vector.broadcast %54 : f32 to vector<1x128xf32>
    %56 = arith.mulf %55, %1 : vector<1x128xf32>
    %57 = tpu.concatenate %53, %56 in 0 : vector<1x128xf32>, vector<1x128xf32> -> vector<2x128xf32>
    %58 = vector.broadcast %2 : vector<1x128xf32> to vector<2x128xf32>
    %59 = arith.addf %57, %58 : vector<2x128xf32>
    %c6 = arith.constant 6 : index
    %60 = memref.load %arg0[%c6] : memref<16xf32, #tpu.memory_space<smem>>
    %61 = vector.broadcast %60 : f32 to vector<1x128xf32>
    %62 = arith.mulf %61, %1 : vector<1x128xf32>
    %c14 = arith.constant 14 : index
    %63 = memref.load %arg0[%c14] : memref<16xf32, #tpu.memory_space<smem>>
    %64 = vector.broadcast %63 : f32 to vector<1x128xf32>
    %65 = arith.mulf %64, %1 : vector<1x128xf32>
    %66 = tpu.concatenate %62, %65 in 0 : vector<1x128xf32>, vector<1x128xf32> -> vector<2x128xf32>
    %67 = vector.broadcast %2 : vector<1x128xf32> to vector<2x128xf32>
    %68 = arith.addf %66, %67 : vector<2x128xf32>
    %c7 = arith.constant 7 : index
    %69 = memref.load %arg0[%c7] : memref<16xf32, #tpu.memory_space<smem>>
    %70 = vector.broadcast %69 : f32 to vector<1x128xf32>
    %71 = arith.mulf %70, %1 : vector<1x128xf32>
    %c15 = arith.constant 15 : index
    %72 = memref.load %arg0[%c15] : memref<16xf32, #tpu.memory_space<smem>>
    %73 = vector.broadcast %72 : f32 to vector<1x128xf32>
    %74 = arith.mulf %73, %1 : vector<1x128xf32>
    %75 = tpu.concatenate %71, %74 in 0 : vector<1x128xf32>, vector<1x128xf32> -> vector<2x128xf32>
    %76 = vector.broadcast %2 : vector<1x128xf32> to vector<2x128xf32>
    %77 = arith.addf %75, %76 : vector<2x128xf32>
    %cst = arith.constant 0.000000e+00 : f32
    %78 = vector.broadcast %cst : f32 to vector<2x32xf32>
    %cst_5 = arith.constant 0.000000e+00 : f32
    %79 = vector.broadcast %cst_5 : f32 to vector<2x32xf32>
    %80 = arith.truncf %78 : vector<2x32xf32> to vector<2x32xbf16>
    %cst_6 = arith.constant dense<0.000000e+00> : vector<2x128xf32>
    %81 = tpu.matmul %80, %4, %cst_6 {dimension_numbers = #tpu.dot_dimension_numbers<[1], [0], [0], [1], [0, 0, 1, 1], [], []>} : vector<2x32xbf16>, vector<32x128xbf16>, vector<2x128xf32> -> vector<2x128xf32>
    %82 = arith.addf %81, %14 : vector<2x128xf32>
    %83 = arith.negf %82 : vector<2x128xf32>
    %84 = math.exp %83 : vector<2x128xf32>
    %cst_7 = arith.constant 1.000000e+00 : f32
    %85 = vector.broadcast %cst_7 : f32 to vector<2x128xf32>
    %86 = arith.addf %85, %84 : vector<2x128xf32>
    %87 = arith.divf %85, %86 : vector<2x128xf32>
    %88 = math.tanh %82 : vector<2x128xf32>
    %89 = vector.extract_strided_slice %87 {offsets = [0, 0], sizes = [2, 32], strides = [1, 1]} : vector<2x128xf32> to vector<2x32xf32>
    %90 = vector.extract_strided_slice %87 {offsets = [0, 32], sizes = [2, 32], strides = [1, 1]} : vector<2x128xf32> to vector<2x32xf32>
    %91 = vector.extract_strided_slice %88 {offsets = [0, 64], sizes = [2, 32], strides = [1, 1]} : vector<2x128xf32> to vector<2x32xf32>
    %92 = vector.extract_strided_slice %87 {offsets = [0, 96], sizes = [2, 32], strides = [1, 1]} : vector<2x128xf32> to vector<2x32xf32>
    %93 = arith.mulf %90, %79 : vector<2x32xf32>
    %94 = arith.mulf %89, %91 : vector<2x32xf32>
    %95 = arith.addf %93, %94 : vector<2x32xf32>
    %96 = math.tanh %95 : vector<2x32xf32>
    %97 = arith.mulf %92, %96 : vector<2x32xf32>
    %98 = arith.truncf %97 : vector<2x32xf32> to vector<2x32xbf16>
    %cst_8 = arith.constant dense<0.000000e+00> : vector<2x128xf32>
    %99 = tpu.matmul %98, %4, %cst_8 {dimension_numbers = #tpu.dot_dimension_numbers<[1], [0], [0], [1], [0, 0, 1, 1], [], []>} : vector<2x32xbf16>, vector<32x128xbf16>, vector<2x128xf32> -> vector<2x128xf32>
    %100 = arith.addf %99, %23 : vector<2x128xf32>
    %101 = arith.negf %100 : vector<2x128xf32>
    %102 = math.exp %101 : vector<2x128xf32>
    %cst_9 = arith.constant 1.000000e+00 : f32
    %103 = vector.broadcast %cst_9 : f32 to vector<2x128xf32>
    %104 = arith.addf %103, %102 : vector<2x128xf32>
    %105 = arith.divf %103, %104 : vector<2x128xf32>
    %106 = math.tanh %100 : vector<2x128xf32>
    %107 = vector.extract_strided_slice %105 {offsets = [0, 0], sizes = [2, 32], strides = [1, 1]} : vector<2x128xf32> to vector<2x32xf32>
    %108 = vector.extract_strided_slice %105 {offsets = [0, 32], sizes = [2, 32], strides = [1, 1]} : vector<2x128xf32> to vector<2x32xf32>
    %109 = vector.extract_strided_slice %106 {offsets = [0, 64], sizes = [2, 32], strides = [1, 1]} : vector<2x128xf32> to vector<2x32xf32>
    %110 = vector.extract_strided_slice %105 {offsets = [0, 96], sizes = [2, 32], strides = [1, 1]} : vector<2x128xf32> to vector<2x32xf32>
    %111 = arith.mulf %108, %95 : vector<2x32xf32>
    %112 = arith.mulf %107, %109 : vector<2x32xf32>
    %113 = arith.addf %111, %112 : vector<2x32xf32>
    %114 = math.tanh %113 : vector<2x32xf32>
    %115 = arith.mulf %110, %114 : vector<2x32xf32>
    %116 = arith.truncf %115 : vector<2x32xf32> to vector<2x32xbf16>
    %cst_10 = arith.constant dense<0.000000e+00> : vector<2x128xf32>
    %117 = tpu.matmul %116, %4, %cst_10 {dimension_numbers = #tpu.dot_dimension_numbers<[1], [0], [0], [1], [0, 0, 1, 1], [], []>} : vector<2x32xbf16>, vector<32x128xbf16>, vector<2x128xf32> -> vector<2x128xf32>
    %118 = arith.addf %117, %32 : vector<2x128xf32>
    %119 = arith.negf %118 : vector<2x128xf32>
    %120 = math.exp %119 : vector<2x128xf32>
    %cst_11 = arith.constant 1.000000e+00 : f32
    %121 = vector.broadcast %cst_11 : f32 to vector<2x128xf32>
    %122 = arith.addf %121, %120 : vector<2x128xf32>
    %123 = arith.divf %121, %122 : vector<2x128xf32>
    %124 = math.tanh %118 : vector<2x128xf32>
    %125 = vector.extract_strided_slice %123 {offsets = [0, 0], sizes = [2, 32], strides = [1, 1]} : vector<2x128xf32> to vector<2x32xf32>
    %126 = vector.extract_strided_slice %123 {offsets = [0, 32], sizes = [2, 32], strides = [1, 1]} : vector<2x128xf32> to vector<2x32xf32>
    %127 = vector.extract_strided_slice %124 {offsets = [0, 64], sizes = [2, 32], strides = [1, 1]} : vector<2x128xf32> to vector<2x32xf32>
    %128 = vector.extract_strided_slice %123 {offsets = [0, 96], sizes = [2, 32], strides = [1, 1]} : vector<2x128xf32> to vector<2x32xf32>
    %129 = arith.mulf %126, %113 : vector<2x32xf32>
    %130 = arith.mulf %125, %127 : vector<2x32xf32>
    %131 = arith.addf %129, %130 : vector<2x32xf32>
    %132 = math.tanh %131 : vector<2x32xf32>
    %133 = arith.mulf %128, %132 : vector<2x32xf32>
    %134 = arith.truncf %133 : vector<2x32xf32> to vector<2x32xbf16>
    %cst_12 = arith.constant dense<0.000000e+00> : vector<2x128xf32>
    %135 = tpu.matmul %134, %4, %cst_12 {dimension_numbers = #tpu.dot_dimension_numbers<[1], [0], [0], [1], [0, 0, 1, 1], [], []>} : vector<2x32xbf16>, vector<32x128xbf16>, vector<2x128xf32> -> vector<2x128xf32>
    %136 = arith.addf %135, %41 : vector<2x128xf32>
    %137 = arith.negf %136 : vector<2x128xf32>
    %138 = math.exp %137 : vector<2x128xf32>
    %cst_13 = arith.constant 1.000000e+00 : f32
    %139 = vector.broadcast %cst_13 : f32 to vector<2x128xf32>
    %140 = arith.addf %139, %138 : vector<2x128xf32>
    %141 = arith.divf %139, %140 : vector<2x128xf32>
    %142 = math.tanh %136 : vector<2x128xf32>
    %143 = vector.extract_strided_slice %141 {offsets = [0, 0], sizes = [2, 32], strides = [1, 1]} : vector<2x128xf32> to vector<2x32xf32>
    %144 = vector.extract_strided_slice %141 {offsets = [0, 32], sizes = [2, 32], strides = [1, 1]} : vector<2x128xf32> to vector<2x32xf32>
    %145 = vector.extract_strided_slice %142 {offsets = [0, 64], sizes = [2, 32], strides = [1, 1]} : vector<2x128xf32> to vector<2x32xf32>
    %146 = vector.extract_strided_slice %141 {offsets = [0, 96], sizes = [2, 32], strides = [1, 1]} : vector<2x128xf32> to vector<2x32xf32>
    %147 = arith.mulf %144, %131 : vector<2x32xf32>
    %148 = arith.mulf %143, %145 : vector<2x32xf32>
    %149 = arith.addf %147, %148 : vector<2x32xf32>
    %150 = math.tanh %149 : vector<2x32xf32>
    %151 = arith.mulf %146, %150 : vector<2x32xf32>
    %152 = arith.truncf %151 : vector<2x32xf32> to vector<2x32xbf16>
    %cst_14 = arith.constant dense<0.000000e+00> : vector<2x128xf32>
    %153 = tpu.matmul %152, %4, %cst_14 {dimension_numbers = #tpu.dot_dimension_numbers<[1], [0], [0], [1], [0, 0, 1, 1], [], []>} : vector<2x32xbf16>, vector<32x128xbf16>, vector<2x128xf32> -> vector<2x128xf32>
    %154 = arith.addf %153, %50 : vector<2x128xf32>
    %155 = arith.negf %154 : vector<2x128xf32>
    %156 = math.exp %155 : vector<2x128xf32>
    %cst_15 = arith.constant 1.000000e+00 : f32
    %157 = vector.broadcast %cst_15 : f32 to vector<2x128xf32>
    %158 = arith.addf %157, %156 : vector<2x128xf32>
    %159 = arith.divf %157, %158 : vector<2x128xf32>
    %160 = math.tanh %154 : vector<2x128xf32>
    %161 = vector.extract_strided_slice %159 {offsets = [0, 0], sizes = [2, 32], strides = [1, 1]} : vector<2x128xf32> to vector<2x32xf32>
    %162 = vector.extract_strided_slice %159 {offsets = [0, 32], sizes = [2, 32], strides = [1, 1]} : vector<2x128xf32> to vector<2x32xf32>
    %163 = vector.extract_strided_slice %160 {offsets = [0, 64], sizes = [2, 32], strides = [1, 1]} : vector<2x128xf32> to vector<2x32xf32>
    %164 = vector.extract_strided_slice %159 {offsets = [0, 96], sizes = [2, 32], strides = [1, 1]} : vector<2x128xf32> to vector<2x32xf32>
    %165 = arith.mulf %162, %149 : vector<2x32xf32>
    %166 = arith.mulf %161, %163 : vector<2x32xf32>
    %167 = arith.addf %165, %166 : vector<2x32xf32>
    %168 = math.tanh %167 : vector<2x32xf32>
    %169 = arith.mulf %164, %168 : vector<2x32xf32>
    %170 = arith.truncf %169 : vector<2x32xf32> to vector<2x32xbf16>
    %cst_16 = arith.constant dense<0.000000e+00> : vector<2x128xf32>
    %171 = tpu.matmul %170, %4, %cst_16 {dimension_numbers = #tpu.dot_dimension_numbers<[1], [0], [0], [1], [0, 0, 1, 1], [], []>} : vector<2x32xbf16>, vector<32x128xbf16>, vector<2x128xf32> -> vector<2x128xf32>
    %172 = arith.addf %171, %59 : vector<2x128xf32>
    %173 = arith.negf %172 : vector<2x128xf32>
    %174 = math.exp %173 : vector<2x128xf32>
    %cst_17 = arith.constant 1.000000e+00 : f32
    %175 = vector.broadcast %cst_17 : f32 to vector<2x128xf32>
    %176 = arith.addf %175, %174 : vector<2x128xf32>
    %177 = arith.divf %175, %176 : vector<2x128xf32>
    %178 = math.tanh %172 : vector<2x128xf32>
    %179 = vector.extract_strided_slice %177 {offsets = [0, 0], sizes = [2, 32], strides = [1, 1]} : vector<2x128xf32> to vector<2x32xf32>
    %180 = vector.extract_strided_slice %177 {offsets = [0, 32], sizes = [2, 32], strides = [1, 1]} : vector<2x128xf32> to vector<2x32xf32>
    %181 = vector.extract_strided_slice %178 {offsets = [0, 64], sizes = [2, 32], strides = [1, 1]} : vector<2x128xf32> to vector<2x32xf32>
    %182 = vector.extract_strided_slice %177 {offsets = [0, 96], sizes = [2, 32], strides = [1, 1]} : vector<2x128xf32> to vector<2x32xf32>
    %183 = arith.mulf %180, %167 : vector<2x32xf32>
    %184 = arith.mulf %179, %181 : vector<2x32xf32>
    %185 = arith.addf %183, %184 : vector<2x32xf32>
    %186 = math.tanh %185 : vector<2x32xf32>
    %187 = arith.mulf %182, %186 : vector<2x32xf32>
    %188 = arith.truncf %187 : vector<2x32xf32> to vector<2x32xbf16>
    %cst_18 = arith.constant dense<0.000000e+00> : vector<2x128xf32>
    %189 = tpu.matmul %188, %4, %cst_18 {dimension_numbers = #tpu.dot_dimension_numbers<[1], [0], [0], [1], [0, 0, 1, 1], [], []>} : vector<2x32xbf16>, vector<32x128xbf16>, vector<2x128xf32> -> vector<2x128xf32>
    %190 = arith.addf %189, %68 : vector<2x128xf32>
    %191 = arith.negf %190 : vector<2x128xf32>
    %192 = math.exp %191 : vector<2x128xf32>
    %cst_19 = arith.constant 1.000000e+00 : f32
    %193 = vector.broadcast %cst_19 : f32 to vector<2x128xf32>
    %194 = arith.addf %193, %192 : vector<2x128xf32>
    %195 = arith.divf %193, %194 : vector<2x128xf32>
    %196 = math.tanh %190 : vector<2x128xf32>
    %197 = vector.extract_strided_slice %195 {offsets = [0, 0], sizes = [2, 32], strides = [1, 1]} : vector<2x128xf32> to vector<2x32xf32>
    %198 = vector.extract_strided_slice %195 {offsets = [0, 32], sizes = [2, 32], strides = [1, 1]} : vector<2x128xf32> to vector<2x32xf32>
    %199 = vector.extract_strided_slice %196 {offsets = [0, 64], sizes = [2, 32], strides = [1, 1]} : vector<2x128xf32> to vector<2x32xf32>
    %200 = vector.extract_strided_slice %195 {offsets = [0, 96], sizes = [2, 32], strides = [1, 1]} : vector<2x128xf32> to vector<2x32xf32>
    %201 = arith.mulf %198, %185 : vector<2x32xf32>
    %202 = arith.mulf %197, %199 : vector<2x32xf32>
    %203 = arith.addf %201, %202 : vector<2x32xf32>
    %204 = math.tanh %203 : vector<2x32xf32>
    %205 = arith.mulf %200, %204 : vector<2x32xf32>
    %206 = arith.truncf %205 : vector<2x32xf32> to vector<2x32xbf16>
    %cst_20 = arith.constant dense<0.000000e+00> : vector<2x128xf32>
    %207 = tpu.matmul %206, %4, %cst_20 {dimension_numbers = #tpu.dot_dimension_numbers<[1], [0], [0], [1], [0, 0, 1, 1], [], []>} : vector<2x32xbf16>, vector<32x128xbf16>, vector<2x128xf32> -> vector<2x128xf32>
    %208 = arith.addf %207, %77 : vector<2x128xf32>
    %209 = arith.negf %208 : vector<2x128xf32>
    %210 = math.exp %209 : vector<2x128xf32>
    %cst_21 = arith.constant 1.000000e+00 : f32
    %211 = vector.broadcast %cst_21 : f32 to vector<2x128xf32>
    %212 = arith.addf %211, %210 : vector<2x128xf32>
    %213 = arith.divf %211, %212 : vector<2x128xf32>
    %214 = math.tanh %208 : vector<2x128xf32>
    %215 = vector.extract_strided_slice %213 {offsets = [0, 0], sizes = [2, 32], strides = [1, 1]} : vector<2x128xf32> to vector<2x32xf32>
    %216 = vector.extract_strided_slice %213 {offsets = [0, 32], sizes = [2, 32], strides = [1, 1]} : vector<2x128xf32> to vector<2x32xf32>
    %217 = vector.extract_strided_slice %214 {offsets = [0, 64], sizes = [2, 32], strides = [1, 1]} : vector<2x128xf32> to vector<2x32xf32>
    %218 = vector.extract_strided_slice %213 {offsets = [0, 96], sizes = [2, 32], strides = [1, 1]} : vector<2x128xf32> to vector<2x32xf32>
    %219 = arith.mulf %216, %203 : vector<2x32xf32>
    %220 = arith.mulf %215, %217 : vector<2x32xf32>
    %221 = arith.addf %219, %220 : vector<2x32xf32>
    %222 = math.tanh %221 : vector<2x32xf32>
    %223 = arith.mulf %218, %222 : vector<2x32xf32>
    %224 = arith.truncf %223 : vector<2x32xf32> to vector<2x32xbf16>
    %cst_22 = arith.constant dense<0.000000e+00> : vector<2x128xf32>
    %225 = tpu.matmul %224, %5, %cst_22 {dimension_numbers = #tpu.dot_dimension_numbers<[1], [0], [0], [1], [0, 0, 1, 1], [], []>} : vector<2x32xbf16>, vector<32x128xbf16>, vector<2x128xf32> -> vector<2x128xf32>
    %226 = vector.broadcast %3 : vector<1x128xf32> to vector<2x128xf32>
    %227 = arith.addf %225, %226 : vector<2x128xf32>
    %c0_23 = arith.constant 0 : index
    %c0_24 = arith.constant 0 : index
    %228 = vector.load %arg3[%c0_23, %c0_24] : memref<2x128xf32, #tpu.memory_space<vmem>>, vector<2x128xf32>
    tpu.vector_store %arg3[%c0_23, %c0_24], %227 {strides = array<i32>} : memref<2x128xf32, #tpu.memory_space<vmem>>, vector<2x128xf32>,
    return
  }
}

</mosaic_0001>

<bundles_post_ra>
// kernel: _lambda_.1
= control target key start
LH: loop header
LB: loop body
LE: loop exit
PB: predicated region body
PF: predicated region fallthrough
CT: control target
= control target key end

     0   :  { %8 = vsyncpa [#allocation5], 0  ;;  %s1274_s0 = inlined_call_operand.vmem [shape: f32[16], index: 0, kind: input, shape index: {}]   ;;  %s1275_s1 = inlined_call_operand.vmem [shape: f32[3,128], index: 1, kind: input, shape index: {}]   ;;  %s1276_s2 = inlined_call_operand.hbm [shape: bf16[64,128], index: 2, kind: input, shape index: {}]   ;;  %s1277_s3 = inlined_call_operand.hbm [shape: f32[2,128], index: 3, kind: output, shape index: {}]  }
   0x1   :  { %9 = vsyncpa [#allocation3], 0 }
   0x2   :  { %10 = vsyncpa [#allocation4], 0  ;;  %s17_s14 = sshll.u32 %s1274_s0, 4  ;;  %s18_s14 = int_to_ptr.vmem [resolvable:$true] %s17_s14 }
   0x3   :  { %s1013_s15 = scalar_lea.vmem %s18_s14, 16  ;;  %p1018_p1 = scmp.lt.s32.totalorder %s18_s14, %s18_s14 }
   0x4   :  { %p1014_p0 = scmp.ne.s32.totalorder %s18_s14, %s1013_s15  ;;  %p1019_p2 = scmp.lt.s32.totalorder %s1013_s15, %s1013_s15 }
   0x6   :  { %p1020_p3 = por %p1019_p2, %p1018_p1 }
   0x8   :  { %p1021_p4 = pnand %p1020_p3, %p1014_p0 }
   0xa   :  { %1024 = shalt.err (!%p1021_p4)
}
   0xb   :  { %s1075_s16 = smov [#allocation2]   ;;  %s1076_s17 = smov [#allocation6]  }
   0xc   :  { %20 = dma.vmem_to_smem %s18_s14, 16, %s1075_s16, [#allocation5]  }
   0xd   :  { %s28_s18 = sshll.u32 %s1076_s17, 4  ;;  %s1025_s21 = scalar_lea.hbm %s1276_s2, 512  ;;  %s29_s18 = int_to_ptr.vmem [resolvable:$true] %s28_s18 }
   0xe   :  { %p1026_p5 = scmp.ne.s32.totalorder %s1276_s2, %s1025_s21  ;;  %p1029_p6 = scmp.lt.u32.totalorder %s1025_s21, %s1276_s2 }
  0x10   :  { %p1031_p7 = pnand %p1029_p6, %p1026_p5 }
  0x12   :  { %1034 = shalt.err (!%p1031_p7)
}
  0x13   :  { %s1035_s25 = scalar_lea.vmem %s29_s18, 512  ;;  %p1040_p9 = scmp.lt.s32.totalorder %s29_s18, %s29_s18 }
  0x14   :  { %p1036_p8 = scmp.ne.s32.totalorder %s29_s18, %s1035_s25  ;;  %p1041_p10 = scmp.lt.s32.totalorder %s1035_s25, %s1035_s25 }
  0x16   :  { %p1042_p11 = por %p1041_p10, %p1040_p9 }
  0x18   :  { %p1043_p12 = pnand %p1042_p11, %p1036_p8 }
  0x1a   :  { %1046 = shalt.err (!%p1043_p12)
}
  0x1b   :  { %s1077_s26 = smov 64   ;;  %s1078_s27 = smov 4  }
  0x1c   :  { %34 = dma.hbm_to_vmem [thread:$0]  %s1276_s2, 512, %s29_s18, [#allocation3], %s1077_s26, %s1077_s26, %s1078_s27  }
  0x1d   :  { %1069 = dma.done.wait [#allocation5], 16  }
  0x1e   :  { %1070 = vsyncadd [#allocation5], 4294967280 }
  0x1f   :  { %1071 = dma.done.wait [#allocation3], 512  }
  0x20   :  { %1072 = vsyncadd [#allocation3], 4294966784 }
  0x21   :  { %41 = sfence }
  0x22   :  { %v1121_v0 = vld [vmem:[#allocation6] sm:$0xff]   ;;  %v1079_v1 = vmov 0.0   ;;  %v1126_v2 = vld [vmem:[#allocation6 + $0x8] sm:$0xff]   ;;  %vm1080_vm0 = vmmov 0   ;;  %v1081_v3 = vmov 0   ;;  %s802_s2 = sld [smem:[#allocation2 + $0x8]]  ;;  %v63_v4 = vlaneseq }
  0x23   :  { %864 = vmatprep.subr.bf16.mxu0 %v1079_v1  ;;  %872 = vmatprep.subr.bf16.mxu1 %v1079_v1  ;;  %s52_s30 = sld [smem:[#allocation2]]  ;;  %v1148_v5 = vld [vmem:[%s1275_s1] sm:$0x7]  ;;  %vm61_vm1 = vcmask 1040384   ;;  %s1082_s1 = smov 32   ;;  %vm157_vm2 = vcmask 261120  }
  0x24   :  { %865 = vmatpush3.bf16.msra.mxu0 %v1121_v0  ;;  %868 = vmatprep.mubr.msk.bf16.mxu0 %vm1080_vm0, %v1079_v1  ;;  %v1150_v7 = vshrl.u32 %v63_v4, 7  ;;  %s804_s6 = sld [smem:[#allocation2 + $0x9]]  ;;  %s806_s8 = sld [smem:[#allocation2 + $0xa]] }
  0x25   :  { %866 = vmatprep.subr.bf16.mxu0 %v1079_v1  ;;  %873 = vmatpush3.bf16.msra.mxu1 %v1121_v0  ;;  %s803_s7 = sld [smem:[#allocation2 + $0x1]]  ;;  %s805_s9 = sld [smem:[#allocation2 + $0x2]] }
  0x26   :  { %874 = vmatprep.subr.bf16.mxu1 %v1079_v1  ;;  %876 = vmatprep.mubr.msk.bf16.mxu1 %vm1080_vm0, %v1079_v1  ;;  %v65_v10 = vsub.s32 1, %v1150_v7  ;;  %s808_s10 = sld [smem:[#allocation2 + $0xb]]  ;;  %s810_s12 = sld [smem:[#allocation2 + $0xc]] }
  0x27   :  { %s807_s11 = sld [smem:[#allocation2 + $0x3]]  ;;  %s809_s13 = sld [smem:[#allocation2 + $0x4]] }
  0x28   :  { %867 = vmatpush3.bf16.msra.mxu0 %v1126_v2  ;;  %v56_v6 = vstv %s802_s2  ;;  %v1156_v13 = vrot.slane %v1148_v5, %v65_v10  ;;  %s812_s14 = sld [smem:[#allocation2 + $0xd]]  ;;  %s814_s16 = sld [smem:[#allocation2 + $0xe]] }
  0x29   :  { %875 = vmatpush3.bf16.msra.mxu1 %v1126_v2  ;;  %880 = vmatprep.subr.bf16.mxu0 %v1079_v1  ;;  %v57_v8 = vmul.f32 %v56_v6, %v1148_v5  ;;  %v53_v9 = vstv %s52_s30  ;;  %s811_s15 = sld [smem:[#allocation2 + $0x5]]  ;;  %s813_s17 = sld [smem:[#allocation2 + $0x6]] }
  0x2a   :  { %888 = vmatprep.subr.bf16.mxu1 %v1079_v1  ;;  %v54_v11 = vmul.f32 %v53_v9, %v1148_v5  ;;  %v72_v36 = vstv %s804_s6  ;;  %v83_v63 = vstv %s806_s8  ;;  %s816_s18 = sld [smem:[#allocation2 + $0xf]]  ;;  %s1083_s20 = smov [#allocation7]  }
  0x2b   :  { %869 = vmatmul.mubr.bf16.vlgmr.msra.gmra.mrb[0].mxu0 %v1081_v3  ;;  %v59_v12 = vrot.slane %v57_v8, 7  ;;  %v73_v37 = vmul.f32 %v72_v36, %v1148_v5  ;;  %v69_v38 = vstv %s803_s7  ;;  %v84_v3 = vmul.f32 %v83_v63, %v1148_v5  ;;  %s815_s19 = sld [smem:[#allocation2 + $0x7]]  ;;  %s792_s21 = sshll.u32 %s1083_s20, 4  ;;  %s793_s21 = int_to_ptr.vmem [resolvable:$true] %s792_s21 }
  0x2c   :  { %881 = vmatpush3.bf16.msra.mxu0 %v1121_v0  ;;  %884 = vmatprep.mubr.msk.bf16.mxu0 %vm1080_vm0, %v1079_v1  ;;  %v70_v39 = vmul.f32 %v69_v38, %v1148_v5  ;;  %v80_v4 = vstv %s805_s9  ;;  %s1047_s22 = scalar_lea.vmem %s793_s21, 32  ;;  %p1052_p0 = scmp.lt.s32.totalorder %s793_s21, %s793_s21 }
  0x2d   :  { %882 = vmatprep.subr.bf16.mxu0 %v1079_v1  ;;  %v62_v14 = vsel %vm61_vm1, %v54_v11, %v59_v12  ;;  %v75_v40 = vrot.slane %v73_v37, 7  ;;  %v81_v6 = vmul.f32 %v80_v4, %v1148_v5  ;;  %v86_v8 = vrot.slane %v84_v3, 7  ;;  %p1048_p13 = scmp.ne.s32.totalorder %s793_s21, %s1047_s22  ;;  %p1053_p1 = scmp.lt.s32.totalorder %s1047_s22, %s1047_s22 }
  0x2e   :  { %v67_v15 = vadd.f32 %v1156_v13, %v62_v14 }
  0x2f   :  { %v77_v41 = vsel %vm61_vm1, %v70_v39, %v75_v40  ;;  %v88_v9 = vsel %vm61_vm1, %v81_v6, %v86_v8  ;;  %p1054_p2 = por %p1053_p1, %p1052_p0 }
  0x30   :  { %883 = vmatpush3.bf16.msra.mxu0 %v1126_v2  ;;  %v78_v42 = vadd.f32 %v77_v41, %v1156_v13  ;;  %v89_v10 = vadd.f32 %v88_v9, %v1156_v13 }
  0x31   :  { %896 = vmatprep.subr.bf16.mxu0 %v1079_v1  ;;  %p1055_p3 = pnand %p1054_p2, %p1048_p13 }
  0xfe   :  { %v195_v16 = vpop.f32.mrb[0].mxu0 }
  0xff   :  { %v196_v17 = vadd.f32 %v195_v16, %v67_v15  ;;  %v870_v18 = vpop.f32.mrb[1].mxu0 }
 0x100   :  { %v198_v19 = vpop.f32.mrb[2].mxu0 }
 0x101   :  { %v871_v20 = vpop.f32.mrb[3].mxu0  ;;  %949 = vtanh.f32 %v196_v17  ;;  %v819_v22 = vmul.f32 -1.442695, %v196_v17 }
 0x103   :  { %951 = vpow2.f32 %v819_v22 }
 0x10b   :  { %v950_v21 = vpop.eup %949 }
 0x10c   :  { %210 = vrot.lane.b32.xlu0 %v950_v21, %s1077_s26 }
 0x10d   :  { %v952_v23 = vpop.eup %951 }
 0x10e   :  { %v204_v24 = vadd.f32 1.0, %v952_v23 }
 0x110   :  { %953 = vrcp.f32 %v204_v24 }
 0x11a   :  { %v954_v25 = vpop.eup %953 }
 0x11b   :  { %v208_v28 = vmul.f32 0.0, %v954_v25 }
 0x17e   :  { %v211_v26 = vpop.permute.xlu0 %210 }
 0x17f   :  { %v213_v27 = vmul.f32 %v954_v25, %v211_v26 }
 0x181   :  { %215 = vrot.lane.b32.xlu0 %v213_v27, %s1082_s1 }
 0x1f3   :  { %v216_v29 = vpop.permute.xlu0 %215 }
 0x1f4   :  { %v218_v30 = vadd.f32 %v216_v29, %v208_v28 }
 0x1f6   :  { %955 = vtanh.f32 %v218_v30 }
 0x200   :  { %v956_v31 = vpop.eup %955 }
 0x201   :  { %221 = vrot.lane.b32.xlu1 %v956_v31, %s1077_s26 }
 0x273   :  { %v222_v32 = vpop.permute.xlu1 %221 }
 0x274   :  { %v224_v33 = vmul.f32 %v954_v25, %v222_v32  ;;  %v94_v32 = vstv %s808_s10 }
 0x276   :  { %v225_v34 = vpack.c.bf16 %v224_v33, %v224_v33  ;;  %v95_v33 = vmul.f32 %v94_v32, %v1148_v5 }
 0x278   :  { %227 = vrot.lane.b32.xlu1 %v225_v34, %s1082_s1  ;;  %v91_v34 = vstv %s807_s11  ;;  %v97_v36 = vrot.slane %v95_v33, 7 }
 0x2ea   :  { %v228_v35 = vpop.permute.xlu1 %227 }
 0x2eb   :  { %877 = vmatmul.mubr.msk.bf16.vlgmr.msra.gmra.mrb[0].mxu1 %vm157_vm2, %v228_v35  ;;  %v92_v35 = vmul.f32 %v91_v34, %v1148_v5 }
 0x2ec   :  { %889 = vmatpush3.bf16.msra.mxu1 %v1121_v0  ;;  %892 = vmatprep.mubr.msk.bf16.mxu1 %vm1080_vm0, %v1079_v1 }
 0x2ed   :  { %890 = vmatprep.subr.bf16.mxu1 %v1079_v1  ;;  %v99_v37 = vsel %vm61_vm1, %v92_v35, %v97_v36 }
 0x2ee   :  { %v100_v38 = vadd.f32 %v99_v37, %v1156_v13 }
 0x2f0   :  { %891 = vmatpush3.bf16.msra.mxu1 %v1126_v2 }
 0x2f1   :  { %904 = vmatprep.subr.bf16.mxu1 %v1079_v1 }
 0x3be   :  { %v266_v43 = vpop.f32.mrb[0].mxu1 }
 0x3bf   :  { %v267_v44 = vadd.f32 %v266_v43, %v78_v42  ;;  %v878_v45 = vpop.f32.mrb[1].mxu1 }
 0x3c0   :  { %v269_v46 = vpop.f32.mrb[2].mxu1 }
 0x3c1   :  { %957 = vtanh.f32 %v267_v44  ;;  %v879_v47 = vpop.f32.mrb[3].mxu1  ;;  %v821_v49 = vmul.f32 -1.442695, %v267_v44 }
 0x3c3   :  { %959 = vpow2.f32 %v821_v49 }
 0x3cb   :  { %v958_v48 = vpop.eup %957 }
 0x3cc   :  { %281 = vrot.lane.b32.xlu0 %v958_v48, %s1077_s26 }
 0x3cd   :  { %v960_v50 = vpop.eup %959 }
 0x3ce   :  { %v275_v51 = vadd.f32 1.0, %v960_v50 }
 0x3d0   :  { %961 = vrcp.f32 %v275_v51 }
 0x3da   :  { %v962_v52 = vpop.eup %961 }
 0x3db   :  { %v279_v55 = vmul.f32 %v962_v52, %v218_v30 }
 0x43e   :  { %v282_v53 = vpop.permute.xlu0 %281 }
 0x43f   :  { %v284_v54 = vmul.f32 %v962_v52, %v282_v53 }
 0x441   :  { %286 = vrot.lane.b32.xlu1 %v284_v54, %s1082_s1 }
 0x4b3   :  { %v287_v56 = vpop.permute.xlu1 %286 }
 0x4b4   :  { %v289_v57 = vadd.f32 %v287_v56, %v279_v55 }
 0x4b6   :  { %963 = vtanh.f32 %v289_v57 }
 0x4c0   :  { %v964_v58 = vpop.eup %963 }
 0x4c1   :  { %292 = vrot.lane.b32.xlu0 %v964_v58, %s1077_s26 }
 0x533   :  { %v293_v59 = vpop.permute.xlu0 %292 }
 0x534   :  { %v295_v60 = vmul.f32 %v962_v52, %v293_v59  ;;  %v105_v59 = vstv %s810_s12 }
 0x536   :  { %v296_v61 = vpack.c.bf16 %v295_v60, %v295_v60  ;;  %v106_v60 = vmul.f32 %v105_v59, %v1148_v5 }
 0x538   :  { %298 = vrot.lane.b32.xlu1 %v296_v61, %s1082_s1  ;;  %v102_v61 = vstv %s809_s13  ;;  %v108_v63 = vrot.slane %v106_v60, 7 }
 0x5aa   :  { %v299_v62 = vpop.permute.xlu1 %298 }
 0x5ab   :  { %885 = vmatmul.mubr.msk.bf16.vlgmr.msra.gmra.mrb[4].mxu0 %vm157_vm2, %v299_v62  ;;  %v103_v62 = vmul.f32 %v102_v61, %v1148_v5 }
 0x5ac   :  { %897 = vmatpush3.bf16.msra.mxu0 %v1121_v0  ;;  %900 = vmatprep.mubr.msk.bf16.mxu0 %vm1080_vm0, %v1079_v1 }
 0x5ad   :  { %898 = vmatprep.subr.bf16.mxu0 %v1079_v1  ;;  %v110_v3 = vsel %vm61_vm1, %v103_v62, %v108_v63 }
 0x5ae   :  { %v111_v4 = vadd.f32 %v110_v3, %v1156_v13 }
 0x5b0   :  { %899 = vmatpush3.bf16.msra.mxu0 %v1126_v2 }
 0x5b1   :  { %912 = vmatprep.subr.bf16.mxu0 %v1079_v1 }
 0x67e   :  { %v337_v11 = vpop.f32.mrb[4].mxu0 }
 0x67f   :  { %v338_v12 = vadd.f32 %v337_v11, %v89_v10  ;;  %v886_v14 = vpop.f32.mrb[5].mxu0 }
 0x680   :  { %v340_v15 = vpop.f32.mrb[6].mxu0 }
 0x681   :  { %965 = vtanh.f32 %v338_v12  ;;  %v887_v16 = vpop.f32.mrb[7].mxu0  ;;  %v823_v18 = vmul.f32 -1.442695, %v338_v12 }
 0x683   :  { %967 = vpow2.f32 %v823_v18 }
 0x68b   :  { %v966_v17 = vpop.eup %965 }
 0x68c   :  { %352 = vrot.lane.b32.xlu0 %v966_v17, %s1077_s26 }
 0x68d   :  { %v968_v19 = vpop.eup %967 }
 0x68e   :  { %v346_v20 = vadd.f32 1.0, %v968_v19 }
 0x690   :  { %969 = vrcp.f32 %v346_v20 }
 0x69a   :  { %v970_v21 = vpop.eup %969 }
 0x69b   :  { %v350_v24 = vmul.f32 %v970_v21, %v289_v57 }
 0x6fe   :  { %v353_v22 = vpop.permute.xlu0 %352 }
 0x6ff   :  { %v355_v23 = vmul.f32 %v970_v21, %v353_v22 }
 0x701   :  { %357 = vrot.lane.b32.xlu1 %v355_v23, %s1082_s1 }
 0x773   :  { %v358_v25 = vpop.permute.xlu1 %357 }
 0x774   :  { %v360_v26 = vadd.f32 %v358_v25, %v350_v24 }
 0x776   :  { %971 = vtanh.f32 %v360_v26 }
 0x780   :  { %v972_v27 = vpop.eup %971 }
 0x781   :  { %363 = vrot.lane.b32.xlu0 %v972_v27, %s1077_s26 }
 0x7f3   :  { %v364_v28 = vpop.permute.xlu0 %363 }
 0x7f4   :  { %v366_v29 = vmul.f32 %v970_v21, %v364_v28  ;;  %v116_v28 = vstv %s812_s14 }
 0x7f6   :  { %v367_v30 = vpack.c.bf16 %v366_v29, %v366_v29  ;;  %v117_v29 = vmul.f32 %v116_v28, %v1148_v5 }
 0x7f8   :  { %369 = vrot.lane.b32.xlu1 %v367_v30, %s1082_s1  ;;  %v113_v30 = vstv %s811_s15  ;;  %v119_v32 = vrot.slane %v117_v29, 7 }
 0x86a   :  { %v370_v31 = vpop.permute.xlu1 %369 }
 0x86b   :  { %893 = vmatmul.mubr.msk.bf16.vlgmr.msra.gmra.mrb[4].mxu1 %vm157_vm2, %v370_v31  ;;  %v114_v31 = vmul.f32 %v113_v30, %v1148_v5 }
 0x86c   :  { %905 = vmatpush3.bf16.msra.mxu1 %v1121_v0  ;;  %908 = vmatprep.mubr.msk.bf16.mxu1 %vm1080_vm0, %v1079_v1 }
 0x86d   :  { %906 = vmatprep.subr.bf16.mxu1 %v1079_v1  ;;  %v121_v33 = vsel %vm61_vm1, %v114_v31, %v119_v32 }
 0x870   :  { %907 = vmatpush3.bf16.msra.mxu1 %v1126_v2 }
 0x871   :  { %920 = vmatprep.subr.bf16.mxu1 %v1079_v1 }
 0x93e   :  { %v408_v39 = vpop.f32.mrb[4].mxu1 }
 0x93f   :  { %v409_v40 = vadd.f32 %v408_v39, %v100_v38  ;;  %v894_v41 = vpop.f32.mrb[5].mxu1 }
 0x940   :  { %v411_v42 = vpop.f32.mrb[6].mxu1 }
 0x941   :  { %973 = vtanh.f32 %v409_v40  ;;  %v895_v43 = vpop.f32.mrb[7].mxu1  ;;  %v825_v45 = vmul.f32 -1.442695, %v409_v40 }
 0x943   :  { %975 = vpow2.f32 %v825_v45 }
 0x94b   :  { %v974_v44 = vpop.eup %973 }
 0x94c   :  { %423 = vrot.lane.b32.xlu0 %v974_v44, %s1077_s26 }
 0x94d   :  { %v976_v46 = vpop.eup %975 }
 0x94e   :  { %v417_v47 = vadd.f32 1.0, %v976_v46 }
 0x950   :  { %977 = vrcp.f32 %v417_v47 }
 0x95a   :  { %v978_v48 = vpop.eup %977 }
 0x95b   :  { %v421_v51 = vmul.f32 %v978_v48, %v360_v26 }
 0x9be   :  { %v424_v49 = vpop.permute.xlu0 %423 }
 0x9bf   :  { %v426_v50 = vmul.f32 %v978_v48, %v424_v49 }
 0x9c1   :  { %428 = vrot.lane.b32.xlu1 %v426_v50, %s1082_s1 }
 0xa33   :  { %v429_v52 = vpop.permute.xlu1 %428 }
 0xa34   :  { %v431_v53 = vadd.f32 %v429_v52, %v421_v51 }
 0xa36   :  { %979 = vtanh.f32 %v431_v53 }
 0xa40   :  { %v980_v54 = vpop.eup %979 }
 0xa41   :  { %434 = vrot.lane.b32.xlu0 %v980_v54, %s1077_s26 }
 0xab3   :  { %v435_v55 = vpop.permute.xlu0 %434 }
 0xab4   :  { %v437_v56 = vmul.f32 %v978_v48, %v435_v55  ;;  %v124_v55 = vstv %s813_s17 }
 0xab6   :  { %v438_v57 = vpack.c.bf16 %v437_v56, %v437_v56  ;;  %v125_v56 = vmul.f32 %v124_v55, %v1148_v5 }
 0xab8   :  { %440 = vrot.lane.b32.xlu1 %v438_v57, %s1082_s1 }
 0xb2a   :  { %v441_v58 = vpop.permute.xlu1 %440 }
 0xb2b   :  { %901 = vmatmul.mubr.msk.bf16.vlgmr.msra.gmra.mrb[8].mxu0 %vm157_vm2, %v441_v58 }
 0xb2c   :  { %913 = vmatpush3.bf16.msra.mxu0 %v1121_v0  ;;  %916 = vmatprep.mubr.msk.bf16.mxu0 %vm1080_vm0, %v1079_v1 }
 0xb2d   :  { %914 = vmatprep.subr.bf16.mxu0 %v1079_v1 }
 0xb30   :  { %915 = vmatpush3.bf16.msra.mxu0 %v1126_v2 }
 0xb31   :  { %928 = vmatprep.subr.bf16.mxu0 %v1079_v1 }
 0xbfe   :  { %v479_v6 = vpop.f32.mrb[8].mxu0 }
 0xbff   :  { %v480_v8 = vadd.f32 %v479_v6, %v111_v4  ;;  %v902_v9 = vpop.f32.mrb[9].mxu0 }
 0xc00   :  { %v482_v10 = vpop.f32.mrb[10].mxu0 }
 0xc01   :  { %981 = vtanh.f32 %v480_v8  ;;  %v903_v11 = vpop.f32.mrb[11].mxu0  ;;  %v827_v14 = vmul.f32 -1.442695, %v480_v8 }
 0xc03   :  { %983 = vpow2.f32 %v827_v14 }
 0xc0b   :  { %v982_v12 = vpop.eup %981 }
 0xc0c   :  { %494 = vrot.lane.b32.xlu0 %v982_v12, %s1077_s26 }
 0xc0d   :  { %v984_v15 = vpop.eup %983 }
 0xc0e   :  { %v488_v16 = vadd.f32 1.0, %v984_v15 }
 0xc10   :  { %985 = vrcp.f32 %v488_v16 }
 0xc1a   :  { %v986_v17 = vpop.eup %985 }
 0xc1b   :  { %v492_v20 = vmul.f32 %v986_v17, %v431_v53  ;;  %v127_v53 = vstv %s814_s16 }
 0xc1c   :  { %v128_v54 = vmul.f32 %v127_v53, %v1148_v5 }
 0xc1e   :  { %v130_v57 = vrot.slane %v128_v54, 7 }
 0xc20   :  { %v132_v58 = vsel %vm61_vm1, %v125_v56, %v130_v57 }
 0xc21   :  { %v133_v59 = vadd.f32 %v132_v58, %v1156_v13 }
 0xc7e   :  { %v495_v18 = vpop.permute.xlu0 %494 }
 0xc7f   :  { %v497_v19 = vmul.f32 %v986_v17, %v495_v18 }
 0xc81   :  { %499 = vrot.lane.b32.xlu1 %v497_v19, %s1082_s1 }
 0xcf3   :  { %v500_v21 = vpop.permute.xlu1 %499 }
 0xcf4   :  { %v502_v22 = vadd.f32 %v500_v21, %v492_v20 }
 0xcf6   :  { %987 = vtanh.f32 %v502_v22 }
 0xd00   :  { %v988_v23 = vpop.eup %987 }
 0xd01   :  { %505 = vrot.lane.b32.xlu0 %v988_v23, %s1077_s26 }
 0xd73   :  { %v506_v24 = vpop.permute.xlu0 %505 }
 0xd74   :  { %v508_v25 = vmul.f32 %v986_v17, %v506_v24  ;;  %v135_v24 = vstv %s815_s19 }
 0xd76   :  { %v509_v26 = vpack.c.bf16 %v508_v25, %v508_v25  ;;  %v136_v25 = vmul.f32 %v135_v24, %v1148_v5 }
 0xd78   :  { %511 = vrot.lane.b32.xlu1 %v509_v26, %s1082_s1 }
 0xdea   :  { %v512_v27 = vpop.permute.xlu1 %511 }
 0xdeb   :  { %909 = vmatmul.mubr.msk.bf16.vlgmr.msra.gmra.mrb[8].mxu1 %vm157_vm2, %v512_v27 }
 0xdec   :  { %921 = vmatpush3.bf16.msra.mxu1 %v1121_v0  ;;  %924 = vmatprep.mubr.msk.bf16.mxu1 %vm1080_vm0, %v1079_v1  ;;  %v122_v0 = vadd.f32 %v121_v33, %v1156_v13 }
 0xded   :  { %922 = vmatprep.subr.bf16.mxu1 %v1079_v1 }
 0xdf0   :  { %923 = vmatpush3.bf16.msra.mxu1 %v1126_v2 }
 0xebe   :  { %v550_v34 = vpop.f32.mrb[8].mxu1 }
 0xebf   :  { %v551_v35 = vadd.f32 %v550_v34, %v122_v0  ;;  %v910_v36 = vpop.f32.mrb[9].mxu1 }
 0xec0   :  { %v553_v37 = vpop.f32.mrb[10].mxu1 }
 0xec1   :  { %989 = vtanh.f32 %v551_v35  ;;  %v911_v38 = vpop.f32.mrb[11].mxu1  ;;  %v829_v39 = vmul.f32 -1.442695, %v551_v35 }
 0xec3   :  { %991 = vpow2.f32 %v829_v39 }
 0xecb   :  { %v990_v2 = vpop.eup %989 }
 0xecc   :  { %565 = vrot.lane.b32.xlu0 %v990_v2, %s1077_s26 }
 0xecd   :  { %v992_v40 = vpop.eup %991 }
 0xece   :  { %v559_v41 = vadd.f32 1.0, %v992_v40 }
 0xed0   :  { %993 = vrcp.f32 %v559_v41  ;;  %v947_v41 = vld [vmem:[#allocation6 + $0x10] sm:$0xff]  }
 0xeda   :  { %v994_v42 = vpop.eup %993 }
 0xedb   :  { %v563_v45 = vmul.f32 %v994_v42, %v502_v22  ;;  %v138_v22 = vstv %s816_s18 }
 0xedc   :  { %v139_v23 = vmul.f32 %v138_v22, %v1148_v5 }
 0xede   :  { %v141_v26 = vrot.slane %v139_v23, 7 }
 0xee0   :  { %v143_v27 = vsel %vm61_vm1, %v136_v25, %v141_v26 }
 0xee1   :  { %v144_v28 = vadd.f32 %v143_v27, %v1156_v13 }
 0xf3e   :  { %v566_v43 = vpop.permute.xlu0 %565 }
 0xf3f   :  { %v568_v44 = vmul.f32 %v994_v42, %v566_v43 }
 0xf41   :  { %570 = vrot.lane.b32.xlu1 %v568_v44, %s1082_s1 }
 0xfb3   :  { %v571_v46 = vpop.permute.xlu1 %570 }
 0xfb4   :  { %v573_v47 = vadd.f32 %v571_v46, %v563_v45 }
 0xfb6   :  { %995 = vtanh.f32 %v573_v47 }
 0xfc0   :  { %v996_v48 = vpop.eup %995 }
 0xfc1   :  { %576 = vrot.lane.b32.xlu0 %v996_v48, %s1077_s26  ;;  %v725_v48 = vsub.s32 2, %v1150_v7 }
0x1033   :  { %v577_v49 = vpop.permute.xlu0 %576 }
0x1034   :  { %v579_v50 = vmul.f32 %v994_v42, %v577_v49  ;;  %v948_v42 = vld [vmem:[#allocation6 + $0x18] sm:$0xff]   ;;  %v726_v49 = vrot.slane %v1148_v5, %v725_v48 }
0x1036   :  { %v580_v51 = vpack.c.bf16 %v579_v50, %v579_v50 }
0x1038   :  { %582 = vrot.lane.b32.xlu1 %v580_v51, %s1082_s1 }
0x10aa   :  { %v583_v52 = vpop.permute.xlu1 %582 }
0x10ab   :  { %917 = vmatmul.mubr.msk.bf16.vlgmr.msra.gmra.mrb[12].mxu0 %vm157_vm2, %v583_v52 }
0x10ac   :  { %932 = vmatprep.mubr.msk.bf16.mxu0 %vm1080_vm0, %v1079_v1  ;;  %929 = vmatpush3.bf16.msra.mxu0 %v947_v41 }
0x10ad   :  { %930 = vmatprep.subr.bf16.mxu0 %v1079_v1 }
0x10b0   :  { %931 = vmatpush3.bf16.msra.mxu0 %v948_v42 }
0x117e   :  { %v621_v60 = vpop.f32.mrb[12].mxu0 }
0x117f   :  { %v622_v61 = vadd.f32 %v621_v60, %v133_v59  ;;  %v918_v62 = vpop.f32.mrb[13].mxu0 }
0x1180   :  { %v624_v63 = vpop.f32.mrb[14].mxu0 }
0x1181   :  { %997 = vtanh.f32 %v622_v61  ;;  %v919_v3 = vpop.f32.mrb[15].mxu0  ;;  %v831_v6 = vmul.f32 -1.442695, %v622_v61 }
0x1183   :  { %999 = vpow2.f32 %v831_v6 }
0x118b   :  { %v998_v4 = vpop.eup %997 }
0x118c   :  { %636 = vrot.lane.b32.xlu0 %v998_v4, %s1077_s26 }
0x118d   :  { %v1000_v8 = vpop.eup %999 }
0x118e   :  { %v630_v9 = vadd.f32 1.0, %v1000_v8 }
0x1190   :  { %1001 = vrcp.f32 %v630_v9 }
0x119a   :  { %v1002_v10 = vpop.eup %1001 }
0x119b   :  { %v634_v14 = vmul.f32 %v1002_v10, %v573_v47 }
0x11fe   :  { %v637_v11 = vpop.permute.xlu0 %636 }
0x11ff   :  { %v639_v12 = vmul.f32 %v1002_v10, %v637_v11 }
0x1201   :  { %641 = vrot.lane.b32.xlu1 %v639_v12, %s1082_s1 }
0x1273   :  { %v642_v15 = vpop.permute.xlu1 %641 }
0x1274   :  { %v644_v16 = vadd.f32 %v642_v15, %v634_v14 }
0x1276   :  { %1003 = vtanh.f32 %v644_v16 }
0x1280   :  { %v1004_v17 = vpop.eup %1003 }
0x1281   :  { %647 = vrot.lane.b32.xlu0 %v1004_v17, %s1077_s26 }
0x12f3   :  { %v648_v18 = vpop.permute.xlu0 %647 }
0x12f4   :  { %v650_v19 = vmul.f32 %v1002_v10, %v648_v18 }
0x12f6   :  { %v651_v20 = vpack.c.bf16 %v650_v19, %v650_v19 }
0x12f8   :  { %653 = vrot.lane.b32.xlu1 %v651_v20, %s1082_s1 }
0x136a   :  { %v654_v21 = vpop.permute.xlu1 %653 }
0x136b   :  { %925 = vmatmul.mubr.msk.bf16.vlgmr.msra.gmra.mrb[12].mxu1 %vm157_vm2, %v654_v21 }
0x143e   :  { %v692_v29 = vpop.f32.mrb[12].mxu1 }
0x143f   :  { %v693_v30 = vadd.f32 %v692_v29, %v144_v28  ;;  %v926_v31 = vpop.f32.mrb[13].mxu1 }
0x1440   :  { %v695_v32 = vpop.f32.mrb[14].mxu1 }
0x1441   :  { %1005 = vtanh.f32 %v693_v30  ;;  %v927_v33 = vpop.f32.mrb[15].mxu1  ;;  %v833_v34 = vmul.f32 -1.442695, %v693_v30 }
0x1443   :  { %1007 = vpow2.f32 %v833_v34 }
0x144b   :  { %v1006_v0 = vpop.eup %1005 }
0x144c   :  { %707 = vrot.lane.b32.xlu0 %v1006_v0, %s1077_s26 }
0x144d   :  { %v1008_v35 = vpop.eup %1007 }
0x144e   :  { %v701_v36 = vadd.f32 1.0, %v1008_v35 }
0x1450   :  { %1009 = vrcp.f32 %v701_v36 }
0x145a   :  { %v1010_v37 = vpop.eup %1009 }
0x145b   :  { %v705_v13 = vmul.f32 %v1010_v37, %v644_v16 }
0x14be   :  { %v708_v38 = vpop.permute.xlu0 %707 }
0x14bf   :  { %v710_v2 = vmul.f32 %v1010_v37, %v708_v38 }
0x14c1   :  { %712 = vrot.lane.b32.xlu1 %v710_v2, %s1082_s1 }
0x1533   :  { %v713_v39 = vpop.permute.xlu1 %712 }
0x1534   :  { %v715_v40 = vadd.f32 %v713_v39, %v705_v13 }
0x1536   :  { %1011 = vtanh.f32 %v715_v40 }
0x1540   :  { %v1012_v43 = vpop.eup %1011 }
0x1541   :  { %718 = vrot.lane.b32.xlu0 %v1012_v43, %s1077_s26 }
0x15b3   :  { %v719_v44 = vpop.permute.xlu0 %718 }
0x15b4   :  { %v721_v45 = vmul.f32 %v1010_v37, %v719_v44 }
0x15b6   :  { %v722_v46 = vpack.c.bf16 %v721_v45, %v721_v45 }
0x15b8   :  { %728 = vrot.lane.b32.xlu1 %v722_v46, %s1082_s1 }
0x162a   :  { %v729_v47 = vpop.permute.xlu1 %728 }
0x162b   :  { %933 = vmatmul.mubr.msk.bf16.vlgmr.msra.gmra.mrb[16].mxu0 %vm157_vm2, %v729_v47 }
0x16fe   :  { %v779_v50 = vpop.f32.mrb[16].mxu0 }
0x16ff   :  { %v780_v1 = vadd.f32 %v779_v50, %v726_v49  ;;  %v934_v51 = vpop.f32.mrb[17].mxu0 }
0x1700   :  { %v782_v52 = vpop.f32.mrb[18].mxu0 }
0x1701   :  { %785 = vst [vmem:[#allocation7] sm:$0x3] %v780_v1  ;;  %v935_v53 = vpop.f32.mrb[19].mxu0 }
0x1702   :  { %1058 = shalt.err (!%p1055_p3)
}
0x1703   :  { %s1059_s24 = scalar_lea.hbm %s1277_s3, 32 }
0x1704   :  { %p1060_p4 = scmp.ne.s32.totalorder %s1277_s3, %s1059_s24  ;;  %p1063_p5 = scmp.lt.u32.totalorder %s1059_s24, %s1277_s3 }
0x1706   :  { %p1065_p6 = pnand %p1063_p5, %p1060_p4 }
0x1708   :  { %1068 = shalt.err (!%p1065_p6)
}
0x1709   :  { %795 = dma.vmem_to_hbm [thread:$0]  %s793_s21, 32, %s1277_s3, [#allocation4]  }
0x170a   :  { %1073 = dma.done.wait [#allocation4], 32  }
0x170b   :  { %1074 = vsyncadd [#allocation4], 4294967264 }
0x170c   :  { %799 = vsyncpa [#allocation3], 1 }
0x170d   :  { %800 = vsyncpa [#allocation4], 1 }
0x170e   :  { %801 = vsyncpa [#allocation5], 1 }

</bundles_post_ra>
